<compile_context>
chip_gen: v7x
topology: tpu7x:2x2x1
jax: 0.10.0
libtpu: 0.0.40
codegen_flags: <defaults>
</compile_context>

<pallas_src>
import functools

import jax
import jax.numpy as jnp
from jax.experimental import pallas as pl
from jax.experimental.pallas import tpu as pltpu


# ----------------------------------------------------------------------------
# helpers
# ----------------------------------------------------------------------------
def _round_up(v: int, m: int) -> int:
    return ((v + m - 1) // m) * m


# ----------------------------------------------------------------------------
# Fused Pallas kernel: all GCN layers in one kernel invocation
# ----------------------------------------------------------------------------
def _make_fused_gcn_kernel(*, n_layers: int, activations: tuple,
                           repeat: int, use_bias: bool, mxu_dtype):
    def kernel(*refs):
        s_ref, h_ref = refs[0], refs[1]
        param_refs = refs[2:-1]
        out_ref = refs[-1]

        s = s_ref[...]                       # (n_pad, n_pad), mxu_dtype, factor folded in
        h = h_ref[...].astype(jnp.float32)   # (n_pad, F0_pad)

        for li in range(n_layers):
            if use_bias:
                w_ref, b_ref = param_refs[2 * li], param_refs[2 * li + 1]
            else:
                w_ref, b_ref = param_refs[li], None
            w = w_ref[...]                   # (Fin_pad, Fout_pad), mxu_dtype

            def _propagate(z):
                # factor already folded into s; f32 accumulation on the MXU
                for _ in range(repeat):
                    z = jnp.dot(s, z.astype(mxu_dtype),
                                preferred_element_type=jnp.float32)
                return z

            if w.shape[1] < w.shape[0]:
                # narrowing layer: project first, then propagate the narrower h
                # (valid: S^r (h W) == (S^r h) W; bias/activation come after)
                z = jnp.dot(h.astype(mxu_dtype), w,
                            preferred_element_type=jnp.float32)
                z = _propagate(z)
            else:
                z = _propagate(h)
                z = jnp.dot(z.astype(mxu_dtype), w,
                            preferred_element_type=jnp.float32)

            if b_ref is not None:
                z = z + b_ref[...]           # (1, Fout_pad) f32, lane broadcast

            act = activations[li]
            if act == "identity":
                pass
            elif act == "tanh":
                z = jnp.tanh(z)
            elif act == "relu":
                z = jnp.maximum(z, 0.0)
            elif act == "sigmoid":
                # exp on EUP + approximate reciprocal (EUP) -> VALU stays free
                z = pl.reciprocal(1.0 + jnp.exp(-z), approx=True)
            else:
                raise ValueError(f"unsupported activation: {act}")

            h = z                            # f32 carried to next layer

        out_ref[...] = h.astype(out_ref.dtype)

    return kernel


@functools.partial(
    jax.jit,
    static_argnames=("repeat", "activations", "use_bias", "mxu_dtype"))
def fused_gcn_forward(support, x, weights, biases, factor, *, repeat: int,
                      activations, use_bias: bool, mxu_dtype=jnp.float32):
    """Run the whole GCN stack in one Pallas call (everything VMEM-resident)."""
    n_node, f_in = x.shape
    n_layers = len(weights)
    out_dim = weights[-1].shape[1]

    # --- padding: sublane-align nodes, lane-fill (>=128) every feature dim ---
    n_pad = max(_round_up(n_node, 8), 8)
    feat = [f_in] + [w.shape[1] for w in weights]
    feat_pad = [_round_up(max(f, 1), 128) for f in feat]

    # Fold factor into the support ONCE (removes repeat * n_layers VPU passes).
    s_eff = (support.astype(jnp.float32)
             * jnp.asarray(factor, jnp.float32)).astype(mxu_dtype)
    s_pad = jnp.pad(s_eff, ((0, n_pad - n_node), (0, n_pad - n_node)))

    x_pad = jnp.pad(x.astype(jnp.float32),
                    ((0, n_pad - n_node), (0, feat_pad[0] - f_in)))

    padded_params = []
    for li, w in enumerate(weights):
        wp = jnp.pad(w.astype(mxu_dtype),
                     ((0, feat_pad[li] - w.shape[0]),
                      (0, feat_pad[li + 1] - w.shape[1])))
        padded_params.append(wp)
        if use_bias:
            b2 = biases[li].astype(jnp.float32).reshape(1, -1)
            bp = jnp.pad(b2, ((0, 0), (0, feat_pad[li + 1] - b2.shape[1])))
            padded_params.append(bp)

    kernel = _make_fused_gcn_kernel(
        n_layers=n_layers, activations=tuple(activations),
        repeat=repeat, use_bias=use_bias, mxu_dtype=mxu_dtype)

    # --- VMEM budget (single grid point -> single-buffered) ------------------
    def _nbytes(shape, dt):
        return int(jnp.dtype(dt).itemsize) * int(shape[0]) * int(shape[1])

    need = _nbytes(s_pad.shape, mxu_dtype) + _nbytes(x_pad.shape, jnp.float32)
    for p in padded_params:
        need += _nbytes(p.shape, p.dtype)
    need += _nbytes((n_pad, feat_pad[-1]), x.dtype)       # output tile
    need += 4 * n_pad * max(feat_pad) * 2                  # live f32 intermediates
    vmem_limit = int(min(48 << 20, max(2 * need + (2 << 20), 16 << 20)))

    n_inputs = 2 + len(padded_params)
    in_specs = [pl.BlockSpec(memory_space=pltpu.MemorySpace.VMEM)
                for _ in range(n_inputs)]
    out_spec = pl.BlockSpec(memory_space=pltpu.MemorySpace.VMEM)

    out_pad = pl.pallas_call(
        kernel,
        out_shape=jax.ShapeDtypeStruct((n_pad, feat_pad[-1]), x.dtype),
        in_specs=in_specs,
        out_specs=out_spec,
        compiler_params=pltpu.CompilerParams(vmem_limit_bytes=vmem_limit),
    )(s_pad, x_pad, *padded_params)

    return out_pad[:n_node, :out_dim]


# ----------------------------------------------------------------------------
# GCN module wrapper (glue in plain JAX)
# ----------------------------------------------------------------------------
class GCN:
    def __init__(self, nodes, support_name, activations=None, dropouts=None,
                 repeat=1, factor=1.0, bias=False, mxu_dtype=jnp.float32):
        if activations is None or len(activations) == 0:
            activations = ["identity"] * (len(nodes) - 1)
        assert len(activations) == len(nodes) - 1
        self._nodes = nodes
        self._support_name = support_name
        self._activations = tuple(activations)
        self._repeat = repeat
        self._factor = factor
        self._bias = bias
        self._mxu_dtype = mxu_dtype

        # Deterministic parameter init (synthetic; not a checkpoint load).
        self.weights = []
        self.biases = []
        for li, (n_in, n_out) in enumerate(zip(nodes[:-1], nodes[1:])):
            w = (jnp.arange(n_in * n_out, dtype=jnp.float32)
                 .reshape(n_in, n_out) % 7 - 3.0) * (0.1 / (li + 1))
            self.weights.append(w)
            if bias:
                b = (jnp.arange(n_out, dtype=jnp.float32) % 5 - 2.0) * 0.05
            else:
                b = jnp.zeros((n_out,), dtype=jnp.float32)
            self.biases.append(b)

    def forward(self, data, *, supports):
        support = supports[self._support_name]
        h = data  # "unique_item" of the collection; (n_node, n_feature)
        assert h.ndim == 2, "only rank-2 node features supported"
        n_node = h.shape[0]
        h2 = h.reshape(n_node, -1)  # _propagate reshape (no-op for 2-D data)
        out = fused_gcn_forward(
            support, h2,
            tuple(self.weights),
            tuple(self.biases) if self._bias else (),
            self._factor,
            repeat=self._repeat, activations=self._activations,
            use_bias=self._bias, mxu_dtype=self._mxu_dtype)
        return out

    # pure-JAX reference for verification (faithful to the torch semantics)
    def forward_ref(self, data, *, supports):
        support = supports[self._support_name]
        h = data
        act_map = {
            "identity": lambda z: z,
            "tanh": jnp.tanh,
            "relu": lambda z: jnp.maximum(z, 0.0),
            "sigmoid": lambda z: 1.0 / (1.0 + jnp.exp(-z)),
        }
        for i, (w, b) in enumerate(zip(self.weights, self.biases)):
            for _ in range(self._repeat):
                h = (support @ h) * self._factor
            h = h @ w
            if self._bias:
                h = h + b
            h = act_map[self._activations[i]](h)
        return h


if __name__ == "__main__":
    key = jax.random.PRNGKey(0)
    k_x, k_a = jax.random.split(key)

    n_node = 64
    nodes = [4, 8, 8]                       # feature widths per layer
    activations = ["tanh", "identity"]
    repeat = 2
    factor = 0.7

    # node features: (n_node, n_feature)
    x = jax.random.normal(k_x, (n_node, nodes[0]), dtype=jnp.float32)

    # dense row-normalized adjacency as the "support"
    adj = (jax.random.uniform(k_a, (n_node, n_node)) < 0.15).astype(jnp.float32)
    adj = adj + jnp.eye(n_node, dtype=jnp.float32)          # self loops
    support = adj / jnp.sum(adj, axis=1, keepdims=True)     # row-normalize

    supports = {"nodal": support}

    # --- f32 MXU operands, no bias: tight check vs reference -----------------
    model = GCN(nodes, support_name="nodal", activations=activations,
                dropouts=None, repeat=repeat, factor=factor, bias=False)
    out = jax.block_until_ready(model.forward(x, supports=supports))
    ref = model.forward_ref(x, supports=supports)
    assert out.shape == (n_node, nodes[-1])
    assert jnp.allclose(out, ref, atol=1e-4, rtol=1e-4), "f32 mismatch vs reference"

    # --- f32 with bias + relu: exercises the bias DMA path -------------------
    model_b = GCN(nodes, support_name="nodal", activations=["tanh", "relu"],
                  dropouts=None, repeat=repeat, factor=factor, bias=True)
    out_b = jax.block_until_ready(model_b.forward(x, supports=supports))
    ref_b = model_b.forward_ref(x, supports=supports)
    assert jnp.allclose(out_b, ref_b, atol=1e-4, rtol=1e-4), "bias-path mismatch"

    # --- sigmoid path (EUP exp + approx reciprocal): loose tolerance ---------
    model_s = GCN(nodes, support_name="nodal", activations=["sigmoid", "tanh"],
                  dropouts=None, repeat=1, factor=1.0, bias=True)
    out_s = jax.block_until_ready(model_s.forward(x, supports=supports))
    ref_s = model_s.forward_ref(x, supports=supports)
    assert jnp.allclose(out_s, ref_s, atol=1e-2, rtol=1e-2), "sigmoid-path mismatch"

    # --- bf16 MXU operands (v6e/v7x recommendation), f32 accumulation --------
    model_bf16 = GCN(nodes, support_name="nodal", activations=activations,
                     dropouts=None, repeat=repeat, factor=factor, bias=False,
                     mxu_dtype=jnp.bfloat16)
    out_bf16 = jax.block_until_ready(model_bf16.forward(x, supports=supports))
    assert jnp.allclose(out_bf16, ref, atol=5e-2, rtol=5e-2), "bf16 path diverged"

    print("KERNEL_OK")
</pallas_src>

<mosaic_0001>
module attributes {stable_mosaic.version = 11 : i64} {
  func.func @kernel(%arg0: memref<64x64xf32, #tpu.memory_space<vmem>>, %arg1: memref<64x128xf32, #tpu.memory_space<vmem>>, %arg2: memref<128x128xf32, #tpu.memory_space<vmem>>, %arg3: memref<128x128xf32, #tpu.memory_space<vmem>>, %arg4: memref<64x128xf32, #tpu.memory_space<vmem>>) attributes {dimension_semantics = [], scalar_prefetch = 0 : i64, scratch_operands = 0 : i64, tpu.core_type = #tpu.core_type<tc>} {
    %c0 = arith.constant 0 : index
    %c0_0 = arith.constant 0 : index
    %0 = vector.load %arg0[%c0, %c0_0] : memref<64x64xf32, #tpu.memory_space<vmem>>, vector<64x64xf32>
    %c0_1 = arith.constant 0 : index
    %c0_2 = arith.constant 0 : index
    %1 = vector.load %arg1[%c0_1, %c0_2] : memref<64x128xf32, #tpu.memory_space<vmem>>, vector<64x128xf32>
    %c0_3 = arith.constant 0 : index
    %c0_4 = arith.constant 0 : index
    %2 = vector.load %arg2[%c0_3, %c0_4] : memref<128x128xf32, #tpu.memory_space<vmem>>, vector<128x128xf32>
    %cst = arith.constant dense<0.000000e+00> : vector<64x128xf32>
    %3 = tpu.matmul %0, %1, %cst {dimension_numbers = #tpu.dot_dimension_numbers<[1], [0], [0], [1], [0, 0, 1, 1], [], []>} : vector<64x64xf32>, vector<64x128xf32>, vector<64x128xf32> -> vector<64x128xf32>
    %cst_5 = arith.constant dense<0.000000e+00> : vector<64x128xf32>
    %4 = tpu.matmul %0, %3, %cst_5 {dimension_numbers = #tpu.dot_dimension_numbers<[1], [0], [0], [1], [0, 0, 1, 1], [], []>} : vector<64x64xf32>, vector<64x128xf32>, vector<64x128xf32> -> vector<64x128xf32>
    %cst_6 = arith.constant dense<0.000000e+00> : vector<64x128xf32>
    %5 = tpu.matmul %4, %2, %cst_6 {dimension_numbers = #tpu.dot_dimension_numbers<[1], [0], [0], [1], [0, 0, 1, 1], [], []>} : vector<64x128xf32>, vector<128x128xf32>, vector<64x128xf32> -> vector<64x128xf32>
    %6 = math.tanh %5 : vector<64x128xf32>
    %c0_7 = arith.constant 0 : index
    %c0_8 = arith.constant 0 : index
    %7 = vector.load %arg3[%c0_7, %c0_8] : memref<128x128xf32, #tpu.memory_space<vmem>>, vector<128x128xf32>
    %cst_9 = arith.constant dense<0.000000e+00> : vector<64x128xf32>
    %8 = tpu.matmul %0, %6, %cst_9 {dimension_numbers = #tpu.dot_dimension_numbers<[1], [0], [0], [1], [0, 0, 1, 1], [], []>} : vector<64x64xf32>, vector<64x128xf32>, vector<64x128xf32> -> vector<64x128xf32>
    %cst_10 = arith.constant dense<0.000000e+00> : vector<64x128xf32>
    %9 = tpu.matmul %0, %8, %cst_10 {dimension_numbers = #tpu.dot_dimension_numbers<[1], [0], [0], [1], [0, 0, 1, 1], [], []>} : vector<64x64xf32>, vector<64x128xf32>, vector<64x128xf32> -> vector<64x128xf32>
    %cst_11 = arith.constant dense<0.000000e+00> : vector<64x128xf32>
    %10 = tpu.matmul %9, %7, %cst_11 {dimension_numbers = #tpu.dot_dimension_numbers<[1], [0], [0], [1], [0, 0, 1, 1], [], []>} : vector<64x128xf32>, vector<128x128xf32>, vector<64x128xf32> -> vector<64x128xf32>
    %c0_12 = arith.constant 0 : index
    %c0_13 = arith.constant 0 : index
    %11 = vector.load %arg4[%c0_12, %c0_13] : memref<64x128xf32, #tpu.memory_space<vmem>>, vector<64x128xf32>
    tpu.vector_store %arg4[%c0_12, %c0_13], %10 {strides = array<i32>} : memref<64x128xf32, #tpu.memory_space<vmem>>, vector<64x128xf32>,
    return
  }
}

</mosaic_0001>

<bundles_post_ra>
// kernel: fused_gcn_forward.1
= control target key start
LH: loop header
LB: loop body
LE: loop exit
PB: predicated region body
PF: predicated region fallthrough
CT: control target
= control target key end

     0   :  { %vm49_vm0 = vcmask 523264   ;;  %s1501_s1 = inlined_call_operand.vmem [shape: f32[64,128], index: 1, kind: input, shape index: {}]   ;;  %s1502_s0 = inlined_call_operand.vmem [shape: f32[64,64], index: 0, kind: input, shape index: {}]   ;;  %s1503_s2 = inlined_call_operand.vmem [shape: f32[128,128], index: 2, kind: input, shape index: {}]   ;;  %s1504_s3 = inlined_call_operand.vmem [shape: f32[128,128], index: 3, kind: input, shape index: {}]   ;;  %s1505_s4 = inlined_call_operand.vmem [shape: f32[64,128], index: 4, kind: output, shape index: {}]  }
   0x1   :  { %v25_v0 = vld [vmem:[%s1501_s1] sm:$0xff]  ;;  %v26_v1 = vld [vmem:[%s1501_s1 + $0x8] sm:$0xff]  ;;  %v27_v2 = vld [vmem:[%s1501_s1 + $0x10] sm:$0xff] }
   0x2   :  { %v1084_v3 = vpack.c.bf16 %v26_v1, %v25_v0  ;;  %v28_v4 = vld [vmem:[%s1501_s1 + $0x18] sm:$0xff]  ;;  %v29_v6 = vld [vmem:[%s1501_s1 + $0x20] sm:$0xff]  ;;  %v30_v7 = vld [vmem:[%s1501_s1 + $0x28] sm:$0xff] }
   0x3   :  { %v1088_v5 = vpack.c.bf16 %v28_v4, %v27_v2  ;;  %v1274_v8 = vld [vmem:[%s1502_s0] sm:$0xff]  ;;  %v1092_v9 = vpack.c.bf16 %v30_v7, %v29_v6  ;;  %v31_v10 = vld [vmem:[%s1501_s1 + $0x30] sm:$0xff]  ;;  %v32_v11 = vld [vmem:[%s1501_s1 + $0x38] sm:$0xff] }
   0x4   :  { %1085 = vmatprep.subr.bf16.mxu1 %v1084_v3  ;;  %900 = vmatprep.mubr.msk.f32.mxu1 %vm49_vm0, %v1274_v8  ;;  %v1096_v12 = vpack.c.bf16 %v32_v11, %v31_v10  ;;  %v1287_v13 = vld [vmem:[%s1502_s0 + $0x8] sm:$0xff]  ;;  %v1292_v14 = vld [vmem:[%s1502_s0 + $0x10] sm:$0xff]  ;;  %v1301_v15 = vld [vmem:[%s1502_s0 + $0x18] sm:$0xff] }
   0x5   :  { %1087 = vmatpush3.bf16.msra.mxu1 %v1084_v3  ;;  %v1306_v16 = vld [vmem:[%s1502_s0 + $0x20] sm:$0xff]  ;;  %v1315_v17 = vld [vmem:[%s1502_s0 + $0x28] sm:$0xff]  ;;  %v1320_v18 = vld [vmem:[%s1502_s0 + $0x30] sm:$0xff] }
   0x6   :  { %1089 = vmatprep.subr.bf16.mxu1 %v1088_v5  ;;  %v1329_v19 = vld [vmem:[%s1502_s0 + $0x38] sm:$0xff]  ;;  %v33_v20 = vld [vmem:[%s1503_s2] sm:$0xff]  ;;  %v34_v21 = vld [vmem:[%s1503_s2 + $0x8] sm:$0xff] }
   0x7   :  { %v35_v22 = vld [vmem:[%s1503_s2 + $0x10] sm:$0xff]  ;;  %v1116_v23 = vpack.c.bf16 %v34_v21, %v33_v20  ;;  %v36_v24 = vld [vmem:[%s1503_s2 + $0x18] sm:$0xff]  ;;  %v37_v26 = vld [vmem:[%s1503_s2 + $0x20] sm:$0xff] }
   0x8   :  { %v1120_v25 = vpack.c.bf16 %v36_v24, %v35_v22  ;;  %v38_v27 = vld [vmem:[%s1503_s2 + $0x28] sm:$0xff]  ;;  %v39_v29 = vld [vmem:[%s1503_s2 + $0x30] sm:$0xff]  ;;  %v40_v30 = vld [vmem:[%s1503_s2 + $0x38] sm:$0xff] }
   0x9   :  { %1091 = vmatpush3.bf16.msra.mxu1 %v1088_v5  ;;  %1117 = vmatprep.subr.bf16.mxu0 %v1116_v23  ;;  %v1124_v28 = vpack.c.bf16 %v38_v27, %v37_v26  ;;  %v1128_v31 = vpack.c.bf16 %v40_v30, %v39_v29  ;;  %v41_v32 = vld [vmem:[%s1503_s2 + $0x40] sm:$0xff]  ;;  %v42_v33 = vld [vmem:[%s1503_s2 + $0x48] sm:$0xff]  ;;  %v43_v35 = vld [vmem:[%s1503_s2 + $0x50] sm:$0xff] }
   0xa   :  { %1093 = vmatprep.subr.bf16.mxu1 %v1092_v9  ;;  %1119 = vmatpush3.bf16.msra.mxu0 %v1116_v23  ;;  %v1132_v34 = vpack.c.bf16 %v42_v33, %v41_v32  ;;  %v44_v36 = vld [vmem:[%s1503_s2 + $0x58] sm:$0xff]  ;;  %v45_v38 = vld [vmem:[%s1503_s2 + $0x60] sm:$0xff]  ;;  %v46_v39 = vld [vmem:[%s1503_s2 + $0x68] sm:$0xff] }
   0xb   :  { %1121 = vmatprep.subr.bf16.mxu0 %v1120_v25  ;;  %v1136_v37 = vpack.c.bf16 %v44_v36, %v43_v35  ;;  %v1140_v40 = vpack.c.bf16 %v46_v39, %v45_v38  ;;  %v47_v41 = vld [vmem:[%s1503_s2 + $0x70] sm:$0xff]  ;;  %v48_v42 = vld [vmem:[%s1503_s2 + $0x78] sm:$0xff]  ;;  %v398_v29 = vld [vmem:[%s1504_s3 + $0x8] sm:$0xff] }
   0xc   :  { %v1144_v43 = vpack.c.bf16 %v48_v42, %v47_v41  ;;  %v399_v30 = vld [vmem:[%s1504_s3 + $0x10] sm:$0xff]  ;;  %v400_v32 = vld [vmem:[%s1504_s3 + $0x18] sm:$0xff]  ;;  %v405_v39 = vld [vmem:[%s1504_s3 + $0x40] sm:$0xff] }
   0xd   :  { %1095 = vmatpush3.bf16.msra.mxu1 %v1092_v9  ;;  %v1184_v33 = vpack.c.bf16 %v400_v32, %v399_v30  ;;  %v403_v36 = vld [vmem:[%s1504_s3 + $0x30] sm:$0xff] }
   0xe   :  { %1097 = vmatprep.subr.bf16.mxu1 %v1096_v12  ;;  %1123 = vmatpush3.bf16.msra.mxu0 %v1120_v25  ;;  %v407_v42 = vld [vmem:[%s1504_s3 + $0x50] sm:$0xff] }
   0xf   :  { %1125 = vmatprep.subr.bf16.mxu0 %v1124_v28 }
  0x11   :  { %1099 = vmatpush3.bf16.msra.mxu1 %v1096_v12 }
  0x12   :  { %1127 = vmatpush3.bf16.msra.mxu0 %v1124_v28  ;;  %v397_v28 = vld [vmem:[%s1504_s3] sm:$0xff] }
  0x13   :  { %1129 = vmatprep.subr.bf16.mxu0 %v1128_v31 }
  0x14   :  { %901 = vmatmul.mubr.msk.f32.vlgmr.msra.gmra.mrb[0].mxu1 %vm49_vm0, %v1287_v13 }
  0x15   :  { %903 = vmatprep.mubr.msk.f32.mxu1 %vm49_vm0, %v1292_v14 }
  0x16   :  { %1131 = vmatpush3.bf16.msra.mxu0 %v1128_v31  ;;  %v1180_v31 = vpack.c.bf16 %v398_v29, %v397_v28 }
  0x17   :  { %1133 = vmatprep.subr.bf16.mxu0 %v1132_v34 }
  0x18   :  { %904 = vmatmul.mubr.msk.f32.gmra.mrb[2].mxu1 %vm49_vm0, %v1301_v15 }
  0x19   :  { %906 = vmatprep.mubr.msk.f32.mxu1 %vm49_vm0, %v1306_v16 }
  0x1a   :  { %1135 = vmatpush3.bf16.msra.mxu0 %v1132_v34  ;;  %v402_v34 = vld [vmem:[%s1504_s3 + $0x28] sm:$0xff] }
  0x1b   :  { %1137 = vmatprep.subr.bf16.mxu0 %v1136_v37 }
  0x1c   :  { %907 = vmatmul.mubr.msk.f32.gmra.mrb[4].mxu1 %vm49_vm0, %v1315_v17 }
  0x1d   :  { %909 = vmatprep.mubr.msk.f32.mxu1 %vm49_vm0, %v1320_v18 }
  0x1e   :  { %1139 = vmatpush3.bf16.msra.mxu0 %v1136_v37  ;;  %v404_v37 = vld [vmem:[%s1504_s3 + $0x38] sm:$0xff] }
  0x1f   :  { %1141 = vmatprep.subr.bf16.mxu0 %v1140_v40  ;;  %v1192_v38 = vpack.c.bf16 %v404_v37, %v403_v36 }
  0x20   :  { %910 = vmatmul.mubr.msk.f32.gmra.mrb[6].mxu1 %vm49_vm0, %v1329_v19 }
  0x21   :  { %928 = vmatprep.mubr.msk.f32.mxu1 %vm49_vm0, %v1274_v8 }
  0x22   :  { %1143 = vmatpush3.bf16.msra.mxu0 %v1140_v40  ;;  %v406_v40 = vld [vmem:[%s1504_s3 + $0x48] sm:$0xff] }
  0x23   :  { %1145 = vmatprep.subr.bf16.mxu0 %v1144_v43  ;;  %v1196_v41 = vpack.c.bf16 %v406_v40, %v405_v39 }
  0x26   :  { %1147 = vmatpush3.bf16.msra.mxu0 %v1144_v43  ;;  %v408_v43 = vld [vmem:[%s1504_s3 + $0x58] sm:$0xff] }
  0x27   :  { %1181 = vmatprep.subr.bf16.mxu0 %v1180_v31 }
  0xe7   :  { %v902_v44 = vpop.f32.mrb[0].mxu1 }
  0xe8   :  { %v140_v45 = vpop.f32.mrb[1].mxu1 }
  0xe9   :  { %v1100_v46 = vpack.c.bf16 %v902_v44, %v140_v45  ;;  %v1200_v44 = vpack.c.bf16 %v408_v43, %v407_v42  ;;  %v409_v45 = vld [vmem:[%s1504_s3 + $0x60] sm:$0xff] }
  0xeb   :  { %v905_v47 = vpop.f32.mrb[2].mxu1  ;;  %1101 = vmatprep.subr.bf16.mxu1 %v1100_v46 }
  0xec   :  { %v150_v48 = vpop.f32.mrb[3].mxu1  ;;  %1103 = vmatpush3.bf16.msra.mxu1 %v1100_v46  ;;  %v410_v46 = vld [vmem:[%s1504_s3 + $0x68] sm:$0xff] }
  0xed   :  { %v1104_v49 = vpack.c.bf16 %v905_v47, %v150_v48  ;;  %v1204_v47 = vpack.c.bf16 %v410_v46, %v409_v45  ;;  %v411_v48 = vld [vmem:[%s1504_s3 + $0x70] sm:$0xff] }
  0xef   :  { %v908_v50 = vpop.f32.mrb[4].mxu1  ;;  %1105 = vmatprep.subr.bf16.mxu1 %v1104_v49 }
  0xf0   :  { %v160_v51 = vpop.f32.mrb[5].mxu1  ;;  %1107 = vmatpush3.bf16.msra.mxu1 %v1104_v49  ;;  %v412_v49 = vld [vmem:[%s1504_s3 + $0x78] sm:$0xff] }
  0xf1   :  { %v1108_v52 = vpack.c.bf16 %v908_v50, %v160_v51  ;;  %v1208_v50 = vpack.c.bf16 %v412_v49, %v411_v48 }
  0xf3   :  { %v911_v53 = vpop.f32.mrb[6].mxu1  ;;  %1109 = vmatprep.subr.bf16.mxu1 %v1108_v52 }
  0xf4   :  { %v170_v54 = vpop.f32.mrb[7].mxu1  ;;  %1111 = vmatpush3.bf16.msra.mxu1 %v1108_v52 }
  0xf5   :  { %v1112_v55 = vpack.c.bf16 %v911_v53, %v170_v54 }
  0xf7   :  { %1113 = vmatprep.subr.bf16.mxu1 %v1112_v55 }
  0xf8   :  { %1115 = vmatpush3.bf16.msra.mxu1 %v1112_v55 }
  0xfb   :  { %929 = vmatmul.mubr.msk.f32.vlgmr.msra.gmra.mrb[8].mxu1 %vm49_vm0, %v1287_v13 }
  0xfc   :  { %931 = vmatprep.mubr.msk.f32.mxu1 %vm49_vm0, %v1292_v14 }
  0xff   :  { %932 = vmatmul.mubr.msk.f32.gmra.mrb[10].mxu1 %vm49_vm0, %v1301_v15 }
 0x100   :  { %934 = vmatprep.mubr.msk.f32.mxu1 %vm49_vm0, %v1306_v16 }
 0x103   :  { %935 = vmatmul.mubr.msk.f32.gmra.mrb[12].mxu1 %vm49_vm0, %v1315_v17 }
 0x104   :  { %937 = vmatprep.mubr.msk.f32.mxu1 %vm49_vm0, %v1320_v18 }
 0x107   :  { %938 = vmatmul.mubr.msk.f32.gmra.mrb[14].mxu1 %vm49_vm0, %v1329_v19 }
 0x108   :  { %1000 = vmatprep.mubr.msk.f32.mxu1 %vm49_vm0, %v1274_v8 }
 0x1ce   :  { %v930_v56 = vpop.f32.mrb[8].mxu1 }
 0x1cf   :  { %v245_v57 = vpop.f32.mrb[9].mxu1 }
 0x1d0   :  { %972 = vmatprep.mubr.f32.mxu0 %v245_v57 }
 0x1d1   :  { %973 = vmatmul.mubr.f32.vlgmr.msra.gmra.mrb[0].mxu0 %v930_v56 }
 0x1d2   :  { %v933_v58 = vpop.f32.mrb[10].mxu1  ;;  %1183 = vmatpush3.bf16.msra.mxu0 %v1180_v31 }
 0x1d3   :  { %v255_v59 = vpop.f32.mrb[11].mxu1  ;;  %1185 = vmatprep.subr.bf16.mxu0 %v1184_v33 }
 0x1d4   :  { %975 = vmatprep.mubr.f32.mxu0 %v255_v59 }
 0x1d5   :  { %976 = vmatmul.mubr.f32.gmra.mrb[2].mxu0 %v933_v58 }
 0x1d6   :  { %v936_v60 = vpop.f32.mrb[12].mxu1  ;;  %1187 = vmatpush3.bf16.msra.mxu0 %v1184_v33 }
 0x1d7   :  { %v265_v61 = vpop.f32.mrb[13].mxu1 }
 0x1d8   :  { %978 = vmatprep.mubr.f32.mxu0 %v265_v61 }
 0x1d9   :  { %979 = vmatmul.mubr.f32.gmra.mrb[4].mxu0 %v936_v60 }
 0x1da   :  { %v939_v62 = vpop.f32.mrb[14].mxu1 }
 0x1db   :  { %v275_v63 = vpop.f32.mrb[15].mxu1 }
 0x1dc   :  { %981 = vmatprep.mubr.f32.mxu0 %v275_v63 }
 0x1dd   :  { %982 = vmatmul.mubr.f32.gmra.mrb[6].mxu0 %v939_v62 }
 0x2a4   :  { %v974_v0 = vpop.f32.mrb[0].mxu0 }
 0x2a5   :  { %1212 = vtanh.f32 %v974_v0  ;;  %v350_v1 = vpop.f32.mrb[1].mxu0 }
 0x2a6   :  { %1214 = vtanh.f32 %v350_v1 }
 0x2a8   :  { %v977_v2 = vpop.f32.mrb[2].mxu0 }
 0x2a9   :  { %1216 = vtanh.f32 %v977_v2  ;;  %v360_v3 = vpop.f32.mrb[3].mxu0 }
 0x2aa   :  { %1218 = vtanh.f32 %v360_v3 }
 0x2ac   :  { %v980_v4 = vpop.f32.mrb[4].mxu0 }
 0x2ad   :  { %1220 = vtanh.f32 %v980_v4  ;;  %v370_v5 = vpop.f32.mrb[5].mxu0 }
 0x2ae   :  { %1222 = vtanh.f32 %v370_v5 }
 0x2af   :  { %v1213_v6 = vpop.eup %1212 }
 0x2b0   :  { %v1215_v7 = vpop.eup %1214  ;;  %v983_v9 = vpop.f32.mrb[6].mxu0 }
 0x2b1   :  { %1224 = vtanh.f32 %v983_v9  ;;  %v380_v10 = vpop.f32.mrb[7].mxu0  ;;  %v1148_v11 = vpack.c.bf16 %v1213_v6, %v1215_v7 }
 0x2b2   :  { %1226 = vtanh.f32 %v380_v10 }
 0x2b3   :  { %v1217_v12 = vpop.eup %1216  ;;  %1149 = vmatprep.subr.bf16.mxu1 %v1148_v11 }
 0x2b4   :  { %v1219_v20 = vpop.eup %1218  ;;  %1151 = vmatpush3.bf16.msra.mxu1 %v1148_v11 }
 0x2b5   :  { %v1152_v21 = vpack.c.bf16 %v1217_v12, %v1219_v20 }
 0x2b7   :  { %v1221_v22 = vpop.eup %1220  ;;  %1153 = vmatprep.subr.bf16.mxu1 %v1152_v21 }
 0x2b8   :  { %v1223_v23 = vpop.eup %1222  ;;  %1155 = vmatpush3.bf16.msra.mxu1 %v1152_v21 }
 0x2b9   :  { %v1156_v24 = vpack.c.bf16 %v1221_v22, %v1223_v23 }
 0x2bb   :  { %v1225_v25 = vpop.eup %1224  ;;  %1157 = vmatprep.subr.bf16.mxu1 %v1156_v24 }
 0x2bc   :  { %v1227_v26 = vpop.eup %1226  ;;  %1159 = vmatpush3.bf16.msra.mxu1 %v1156_v24 }
 0x2bd   :  { %v1160_v27 = vpack.c.bf16 %v1225_v25, %v1227_v26 }
 0x2bf   :  { %1161 = vmatprep.subr.bf16.mxu1 %v1160_v27 }
 0x2c0   :  { %1163 = vmatpush3.bf16.msra.mxu1 %v1160_v27 }
 0x2c3   :  { %1001 = vmatmul.mubr.msk.f32.vlgmr.msra.gmra.mrb[16].mxu1 %vm49_vm0, %v1287_v13 }
 0x2c4   :  { %1003 = vmatprep.mubr.msk.f32.mxu1 %vm49_vm0, %v1292_v14 }
 0x2c7   :  { %1004 = vmatmul.mubr.msk.f32.gmra.mrb[18].mxu1 %vm49_vm0, %v1301_v15 }
 0x2c8   :  { %1006 = vmatprep.mubr.msk.f32.mxu1 %vm49_vm0, %v1306_v16 }
 0x2cb   :  { %1007 = vmatmul.mubr.msk.f32.gmra.mrb[20].mxu1 %vm49_vm0, %v1315_v17 }
 0x2cc   :  { %1009 = vmatprep.mubr.msk.f32.mxu1 %vm49_vm0, %v1320_v18 }
 0x2cf   :  { %1010 = vmatmul.mubr.msk.f32.gmra.mrb[22].mxu1 %vm49_vm0, %v1329_v19 }
 0x2d0   :  { %1028 = vmatprep.mubr.msk.f32.mxu1 %vm49_vm0, %v1274_v8  ;;  %v401_v8 = vld [vmem:[%s1504_s3 + $0x20] sm:$0xff] }
 0x2d1   :  { %v1188_v35 = vpack.c.bf16 %v402_v34, %v401_v8 }
 0x2d3   :  { %1189 = vmatprep.subr.bf16.mxu0 %v1188_v35 }
 0x2d4   :  { %1191 = vmatpush3.bf16.msra.mxu0 %v1188_v35 }
 0x2d5   :  { %1193 = vmatprep.subr.bf16.mxu0 %v1192_v38 }
 0x2d8   :  { %1195 = vmatpush3.bf16.msra.mxu0 %v1192_v38 }
 0x2d9   :  { %1197 = vmatprep.subr.bf16.mxu0 %v1196_v41 }
 0x2dc   :  { %1199 = vmatpush3.bf16.msra.mxu0 %v1196_v41 }
 0x2dd   :  { %1201 = vmatprep.subr.bf16.mxu0 %v1200_v44 }
 0x2e0   :  { %1203 = vmatpush3.bf16.msra.mxu0 %v1200_v44 }
 0x2e1   :  { %1205 = vmatprep.subr.bf16.mxu0 %v1204_v47 }
 0x2e4   :  { %1207 = vmatpush3.bf16.msra.mxu0 %v1204_v47 }
 0x2e5   :  { %1209 = vmatprep.subr.bf16.mxu0 %v1208_v50 }
 0x2e8   :  { %1211 = vmatpush3.bf16.msra.mxu0 %v1208_v50 }
 0x396   :  { %v1002_v51 = vpop.f32.mrb[16].mxu1 }
 0x397   :  { %v479_v52 = vpop.f32.mrb[17].mxu1 }
 0x398   :  { %v1164_v53 = vpack.c.bf16 %v1002_v51, %v479_v52 }
 0x39a   :  { %v1005_v54 = vpop.f32.mrb[18].mxu1  ;;  %1165 = vmatprep.subr.bf16.mxu1 %v1164_v53 }
 0x39b   :  { %v489_v55 = vpop.f32.mrb[19].mxu1  ;;  %1167 = vmatpush3.bf16.msra.mxu1 %v1164_v53 }
 0x39c   :  { %v1168_v56 = vpack.c.bf16 %v1005_v54, %v489_v55 }
 0x39e   :  { %v1008_v57 = vpop.f32.mrb[20].mxu1  ;;  %1169 = vmatprep.subr.bf16.mxu1 %v1168_v56 }
 0x39f   :  { %v499_v58 = vpop.f32.mrb[21].mxu1  ;;  %1171 = vmatpush3.bf16.msra.mxu1 %v1168_v56 }
 0x3a0   :  { %v1172_v59 = vpack.c.bf16 %v1008_v57, %v499_v58 }
 0x3a2   :  { %v1011_v60 = vpop.f32.mrb[22].mxu1  ;;  %1173 = vmatprep.subr.bf16.mxu1 %v1172_v59 }
 0x3a3   :  { %v509_v61 = vpop.f32.mrb[23].mxu1  ;;  %1175 = vmatpush3.bf16.msra.mxu1 %v1172_v59 }
 0x3a4   :  { %v1176_v62 = vpack.c.bf16 %v1011_v60, %v509_v61 }
 0x3a6   :  { %1177 = vmatprep.subr.bf16.mxu1 %v1176_v62 }
 0x3a7   :  { %1179 = vmatpush3.bf16.msra.mxu1 %v1176_v62 }
 0x3aa   :  { %1029 = vmatmul.mubr.msk.f32.vlgmr.msra.gmra.mrb[24].mxu1 %vm49_vm0, %v1287_v13 }
 0x3ab   :  { %1031 = vmatprep.mubr.msk.f32.mxu1 %vm49_vm0, %v1292_v14 }
 0x3ae   :  { %1032 = vmatmul.mubr.msk.f32.gmra.mrb[26].mxu1 %vm49_vm0, %v1301_v15 }
 0x3af   :  { %1034 = vmatprep.mubr.msk.f32.mxu1 %vm49_vm0, %v1306_v16 }
 0x3b2   :  { %1035 = vmatmul.mubr.msk.f32.gmra.mrb[28].mxu1 %vm49_vm0, %v1315_v17 }
 0x3b3   :  { %1037 = vmatprep.mubr.msk.f32.mxu1 %vm49_vm0, %v1320_v18 }
 0x3b6   :  { %1038 = vmatmul.mubr.msk.f32.gmra.mrb[30].mxu1 %vm49_vm0, %v1329_v19 }
 0x47d   :  { %v1030_v63 = vpop.f32.mrb[24].mxu1 }
 0x47e   :  { %v584_v13 = vpop.f32.mrb[25].mxu1 }
 0x47f   :  { %1072 = vmatprep.mubr.f32.mxu0 %v584_v13 }
 0x480   :  { %1073 = vmatmul.mubr.f32.vlgmr.msra.gmra.mrb[8].mxu0 %v1030_v63 }
 0x481   :  { %v1033_v14 = vpop.f32.mrb[26].mxu1 }
 0x482   :  { %v594_v0 = vpop.f32.mrb[27].mxu1 }
 0x483   :  { %1075 = vmatprep.mubr.f32.mxu0 %v594_v0 }
 0x484   :  { %1076 = vmatmul.mubr.f32.gmra.mrb[10].mxu0 %v1033_v14 }
 0x485   :  { %v1036_v15 = vpop.f32.mrb[28].mxu1 }
 0x486   :  { %v604_v1 = vpop.f32.mrb[29].mxu1 }
 0x487   :  { %1078 = vmatprep.mubr.f32.mxu0 %v604_v1 }
 0x488   :  { %1079 = vmatmul.mubr.f32.gmra.mrb[12].mxu0 %v1036_v15 }
 0x489   :  { %v1039_v16 = vpop.f32.mrb[30].mxu1 }
 0x48a   :  { %v614_v17 = vpop.f32.mrb[31].mxu1 }
 0x48b   :  { %1081 = vmatprep.mubr.f32.mxu0 %v614_v17 }
 0x48c   :  { %1082 = vmatmul.mubr.f32.gmra.mrb[14].mxu0 %v1039_v16 }
 0x553   :  { %v1074_v18 = vpop.f32.mrb[8].mxu0 }
 0x554   :  { %729 = vst [vmem:[%s1505_s4 + $0x8] sm:$0xff] %v1074_v18  ;;  %v689_v19 = vpop.f32.mrb[9].mxu0 }
 0x555   :  { %728 = vst [vmem:[%s1505_s4] sm:$0xff] %v689_v19 }
 0x557   :  { %v1077_v2 = vpop.f32.mrb[10].mxu0 }
 0x558   :  { %731 = vst [vmem:[%s1505_s4 + $0x18] sm:$0xff] %v1077_v2  ;;  %v699_v3 = vpop.f32.mrb[11].mxu0 }
 0x559   :  { %730 = vst [vmem:[%s1505_s4 + $0x10] sm:$0xff] %v699_v3 }
 0x55b   :  { %v1080_v4 = vpop.f32.mrb[12].mxu0 }
 0x55c   :  { %733 = vst [vmem:[%s1505_s4 + $0x28] sm:$0xff] %v1080_v4  ;;  %v709_v5 = vpop.f32.mrb[13].mxu0 }
 0x55d   :  { %732 = vst [vmem:[%s1505_s4 + $0x20] sm:$0xff] %v709_v5 }
 0x55f   :  { %v1083_v6 = vpop.f32.mrb[14].mxu0 }
 0x560   :  { %735 = vst [vmem:[%s1505_s4 + $0x38] sm:$0xff] %v1083_v6  ;;  %v719_v7 = vpop.f32.mrb[15].mxu0 }
 0x561   :  { %734 = vst [vmem:[%s1505_s4 + $0x30] sm:$0xff] %v719_v7 }

</bundles_post_ra>
